<compile_context>
chip_gen: v6e
topology: v6e:2x2x1
jax: 0.10.0
libtpu: 0.0.40
codegen_flags: <defaults>
</compile_context>

<pallas_src>
import jax
import jax.numpy as jnp
from jax.experimental import pallas as pl
from jax.experimental.pallas import tpu as pltpu


# ----------------------------------------------------------------------------
# In-kernel math helpers
# ----------------------------------------------------------------------------
_SQRT_2_OVER_PI = 0.7978845608028654


def _gelu_tanh(x):
    # tanh-form GELU: 0.5*x*(1 + tanh(sqrt(2/pi)*(x + 0.044715*x^3))).
    # tanh lands on the EUP slot (free vs. the saturated VALU); ~1e-3 abs
    # deviation from PyTorch's exact-erf GELU, below the bf16 noise floor.
    x3 = x * x * x
    return 0.5 * x * (1.0 + jnp.tanh(_SQRT_2_OVER_PI * (x + 0.044715 * x3)))


# ----------------------------------------------------------------------------
# Pallas kernel: 3 x (Linear + GELU) -> Linear -> tanh -> affine rescale.
# bf16 operands on the MXU, f32 accumulation, f32 activation math.
# ----------------------------------------------------------------------------
def _controller_kernel(
    x_ref,
    w1_ref, b1_ref,
    w2_ref, b2_ref,
    w3_ref, b3_ref,
    w4_ref, b4_ref,
    scale_ref, shift_ref,
    ctrl_ref,
):
    h = jnp.dot(x_ref[...], w1_ref[...], preferred_element_type=jnp.float32)
    h = _gelu_tanh(h + b1_ref[...]).astype(jnp.bfloat16)

    h = jnp.dot(h, w2_ref[...], preferred_element_type=jnp.float32)
    h = _gelu_tanh(h + b2_ref[...]).astype(jnp.bfloat16)

    h = jnp.dot(h, w3_ref[...], preferred_element_type=jnp.float32)
    h = _gelu_tanh(h + b3_ref[...]).astype(jnp.bfloat16)

    out = jnp.tanh(
        jnp.dot(h, w4_ref[...], preferred_element_type=jnp.float32) + b4_ref[...]
    )

    # Per-lane affine rescale: lane 0 = acc, lane 1 = delta_f; padded lanes get
    # scale=1 / shift=0 and are sliced away in the wrapper.
    ctrl_ref[...] = (out * scale_ref[...] + shift_ref[...]).astype(ctrl_ref.dtype)


def _round_up(x, m):
    return ((x + m - 1) // m) * m


# ----------------------------------------------------------------------------
# One-time parameter preparation (hoisted OUT of the hot path)
# ----------------------------------------------------------------------------
_NP = 128  # lane-dense padded output width


def prepare_params(params, *, acc_min, acc_max, delta_f_min, delta_f_max):
    """Cast / pad parameters once.  Call this outside the rollout loop."""
    H = params["w1"].shape[1]
    num_control = params["w4"].shape[1]

    prepped = {
        "w1": params["w1"].astype(jnp.bfloat16),
        "w2": params["w2"].astype(jnp.bfloat16),
        "w3": params["w3"].astype(jnp.bfloat16),
        "b1": params["b1"].astype(jnp.float32).reshape(1, H),
        "b2": params["b2"].astype(jnp.float32).reshape(1, H),
        "b3": params["b3"].astype(jnp.float32).reshape(1, H),
        # Final layer zero-padded to a lane-dense 128-wide slab.
        "w4": jnp.zeros((H, _NP), jnp.bfloat16).at[:, :num_control].set(
            params["w4"].astype(jnp.bfloat16)),
        "b4": jnp.zeros((1, _NP), jnp.float32).at[:, :num_control].set(
            params["b4"].astype(jnp.float32).reshape(1, num_control)),
        # Per-lane affine rescale vectors.
        "scale": (jnp.ones((1, _NP), jnp.float32)
                  .at[0, 0].set((acc_max - acc_min) / 2.0)
                  .at[0, 1].set((delta_f_max - delta_f_min) / 2.0)),
        "shift": (jnp.zeros((1, _NP), jnp.float32)
                  .at[0, 0].set((acc_max + acc_min) / 2.0)
                  .at[0, 1].set((delta_f_max + delta_f_min) / 2.0)),
    }
    return prepped


# ----------------------------------------------------------------------------
# Forward wrapper (hot path): pad batch, launch kernel, slice outputs.
# ----------------------------------------------------------------------------
def controller_forward(features, prepped, *, num_state, num_reference):
    """Returns (initial_state, control, reference) like the PyTorch module."""
    B, F = features.shape
    H = prepped["w1"].shape[1]

    # Batch tiling: big tiles amortize per-grid-step overhead; small batches
    # run as a single full-extent tile (block == full dims is always legal).
    if B >= 1024:
        TB = 512
    elif B >= 256:
        TB = 256
    else:
        TB = _round_up(B, 8)
    B_pad = _round_up(B, TB)
    n_tiles = B_pad // TB

    # bf16 activations straight from the wrapper (MXU consumes bf16 anyway).
    x = features.astype(jnp.bfloat16)
    if B_pad != B:
        x = jnp.pad(x, ((0, B_pad - B), (0, 0)))

    const = lambda i: (0, 0)  # weights / biases: resident across the grid
    grid_spec = pltpu.PrefetchScalarGridSpec(
        num_scalar_prefetch=0,
        grid=(n_tiles,),
        in_specs=[
            pl.BlockSpec((TB, F), lambda i: (i, 0)),     # activations tile
            pl.BlockSpec((F, H), const),   pl.BlockSpec((1, H), const),
            pl.BlockSpec((H, H), const),   pl.BlockSpec((1, H), const),
            pl.BlockSpec((H, H), const),   pl.BlockSpec((1, H), const),
            pl.BlockSpec((H, _NP), const), pl.BlockSpec((1, _NP), const),
            pl.BlockSpec((1, _NP), const), pl.BlockSpec((1, _NP), const),
        ],
        out_specs=pl.BlockSpec((TB, _NP), lambda i: (i, 0)),
    )

    flops = 2 * B_pad * (F * H + H * H + H * H + H * _NP)
    transcendentals = B_pad * (3 * H + _NP)          # tanh per GELU + final tanh
    bytes_accessed = (
        x.size * 2
        + (prepped["w1"].size + prepped["w2"].size
           + prepped["w3"].size + prepped["w4"].size) * 2
        + (prepped["b1"].size + prepped["b2"].size + prepped["b3"].size
           + prepped["b4"].size + prepped["scale"].size
           + prepped["shift"].size) * 4
        + B_pad * _NP * 4
    )

    ctrl_padded = pl.pallas_call(
        _controller_kernel,
        out_shape=jax.ShapeDtypeStruct((B_pad, _NP), jnp.float32),
        grid_spec=grid_spec,
        compiler_params=pltpu.CompilerParams(
            dimension_semantics=("parallel",),
        ),
        cost_estimate=pl.CostEstimate(
            flops=flops,
            transcendentals=transcendentals,
            bytes_accessed=bytes_accessed,
        ),
    )(
        x,
        prepped["w1"], prepped["b1"],
        prepped["w2"], prepped["b2"],
        prepped["w3"], prepped["b3"],
        prepped["w4"], prepped["b4"],
        prepped["scale"], prepped["shift"],
    )

    control = ctrl_padded[:B, :2]

    # Pure slicing of the (unpadded) input: plain-JAX glue.
    initial_state = features[:, :num_state]
    reference = features[:, num_state:num_state + num_reference]
    return initial_state, control, reference


# ----------------------------------------------------------------------------
# Deterministic parameter init (PyTorch nn.Linear-style uniform(-k, k))
# ----------------------------------------------------------------------------
def init_params(key, in_features, hidden, num_control):
    def linear(key, fan_in, fan_out):
        kw, kb = jax.random.split(key)
        bound = 1.0 / jnp.sqrt(jnp.float32(fan_in))
        w = jax.random.uniform(kw, (fan_in, fan_out), jnp.float32, -bound, bound)
        b = jax.random.uniform(kb, (1, fan_out), jnp.float32, -bound, bound)
        return w, b

    k1, k2, k3, k4 = jax.random.split(key, 4)
    w1, b1 = linear(k1, in_features, hidden)
    w2, b2 = linear(k2, hidden, hidden)
    w3, b3 = linear(k3, hidden, hidden)
    w4, b4 = linear(k4, hidden, num_control)
    return dict(w1=w1, b1=b1, w2=w2, b2=b2, w3=w3, b3=b3, w4=w4, b4=b4)


if __name__ == "__main__":
    # Small, module-consistent shapes.
    num_state = 4
    num_reference = 4
    num_control = 2
    acc_min, acc_max = -3.0, 3.0
    delta_f_min, delta_f_max = -0.5, 0.5
    batch = 8
    hidden = 256
    in_features = num_state + num_reference

    root = jax.random.PRNGKey(0)
    k_feat, k_params = jax.random.split(root)

    features = jax.random.normal(k_feat, (batch, in_features), jnp.float32)
    params = init_params(k_params, in_features, hidden, num_control)

    # One-time prep (outside any rollout / hot loop).
    prepped = prepare_params(
        params,
        acc_min=acc_min, acc_max=acc_max,
        delta_f_min=delta_f_min, delta_f_max=delta_f_max,
    )
    prepped = jax.tree_util.tree_map(jax.block_until_ready, prepped)

    initial_state, control, reference = controller_forward(
        features, prepped,
        num_state=num_state, num_reference=num_reference,
    )
    jax.block_until_ready((initial_state, control, reference))

    assert initial_state.shape == (batch, num_state)
    assert reference.shape == (batch, num_reference)
    assert control.shape == (batch, 2)
    assert bool(jnp.all(jnp.isfinite(control)))
    # Control is within the affine-rescaled (tanh-bounded) ranges.
    assert bool(jnp.all(control[:, 0] >= acc_min - 1e-4))
    assert bool(jnp.all(control[:, 0] <= acc_max + 1e-4))
    assert bool(jnp.all(control[:, 1] >= delta_f_min - 1e-4))
    assert bool(jnp.all(control[:, 1] <= delta_f_max + 1e-4))
    print("KERNEL_OK")
</pallas_src>

<mosaic_0001>
module attributes {stable_mosaic.version = 11 : i64} {
  func.func @_controller_kernel(%arg0: i32, %arg1: memref<8x8xbf16, #tpu.memory_space<vmem>>, %arg2: memref<8x256xbf16, #tpu.memory_space<vmem>>, %arg3: memref<1x256xf32, #tpu.memory_space<vmem>>, %arg4: memref<256x256xbf16, #tpu.memory_space<vmem>>, %arg5: memref<1x256xf32, #tpu.memory_space<vmem>>, %arg6: memref<256x256xbf16, #tpu.memory_space<vmem>>, %arg7: memref<1x256xf32, #tpu.memory_space<vmem>>, %arg8: memref<256x128xbf16, #tpu.memory_space<vmem>>, %arg9: memref<1x128xf32, #tpu.memory_space<vmem>>, %arg10: memref<1x128xf32, #tpu.memory_space<vmem>>, %arg11: memref<1x128xf32, #tpu.memory_space<vmem>>, %arg12: memref<8x128xf32, #tpu.memory_space<vmem>>) attributes {dimension_semantics = [#tpu.dimension_semantics<parallel>], iteration_bounds = array<i64: 1>, scalar_prefetch = 0 : i64, scratch_operands = 0 : i64, tpu.core_type = #tpu.core_type<tc>, window_params = [{transform_indices = @transform_0, window_bounds = array<i64: 8, 8>}, {pipeline_mode = #tpu.pipeline_mode<synchronous>, transform_indices = @transform_1, window_bounds = array<i64: 8, 256>}, {pipeline_mode = #tpu.pipeline_mode<synchronous>, transform_indices = @transform_2, window_bounds = array<i64: 1, 256>}, {pipeline_mode = #tpu.pipeline_mode<synchronous>, transform_indices = @transform_3, window_bounds = array<i64: 256, 256>}, {pipeline_mode = #tpu.pipeline_mode<synchronous>, transform_indices = @transform_4, window_bounds = array<i64: 1, 256>}, {pipeline_mode = #tpu.pipeline_mode<synchronous>, transform_indices = @transform_5, window_bounds = array<i64: 256, 256>}, {pipeline_mode = #tpu.pipeline_mode<synchronous>, transform_indices = @transform_6, window_bounds = array<i64: 1, 256>}, {pipeline_mode = #tpu.pipeline_mode<synchronous>, transform_indices = @transform_7, window_bounds = array<i64: 256, 128>}, {pipeline_mode = #tpu.pipeline_mode<synchronous>, transform_indices = @transform_8, window_bounds = array<i64: 1, 128>}, {pipeline_mode = #tpu.pipeline_mode<synchronous>, transform_indices = @transform_9, window_bounds = array<i64: 1, 128>}, {pipeline_mode = #tpu.pipeline_mode<synchronous>, transform_indices = @transform_10, window_bounds = array<i64: 1, 128>}, {transform_indices = @transform_11, window_bounds = array<i64: 8, 128>}]} {
    %c0 = arith.constant 0 : index
    %c0_0 = arith.constant 0 : index
    %0 = vector.load %arg1[%c0, %c0_0] : memref<8x8xbf16, #tpu.memory_space<vmem>>, vector<8x8xbf16>
    %c0_1 = arith.constant 0 : index
    %c0_2 = arith.constant 0 : index
    %1 = vector.load %arg2[%c0_1, %c0_2] : memref<8x256xbf16, #tpu.memory_space<vmem>>, vector<8x256xbf16>
    %cst = arith.constant dense<0.000000e+00> : vector<8x256xf32>
    %2 = tpu.matmul %0, %1, %cst {dimension_numbers = #tpu.dot_dimension_numbers<[1], [0], [0], [1], [0, 0, 1, 1], [], []>} : vector<8x8xbf16>, vector<8x256xbf16>, vector<8x256xf32> -> vector<8x256xf32>
    %c0_3 = arith.constant 0 : index
    %c0_4 = arith.constant 0 : index
    %3 = vector.load %arg3[%c0_3, %c0_4] : memref<1x256xf32, #tpu.memory_space<vmem>>, vector<1x256xf32>
    %4 = vector.broadcast %3 : vector<1x256xf32> to vector<8x256xf32>
    %5 = arith.addf %2, %4 : vector<8x256xf32>
    %6 = arith.mulf %5, %5 : vector<8x256xf32>
    %7 = arith.mulf %6, %5 : vector<8x256xf32>
    %cst_5 = arith.constant 5.000000e-01 : f32
    %8 = vector.broadcast %cst_5 : f32 to vector<8x256xf32>
    %9 = arith.mulf %8, %5 : vector<8x256xf32>
    %cst_6 = arith.constant 4.471500e-02 : f32
    %10 = vector.broadcast %cst_6 : f32 to vector<8x256xf32>
    %11 = arith.mulf %10, %7 : vector<8x256xf32>
    %12 = arith.addf %5, %11 : vector<8x256xf32>
    %cst_7 = arith.constant 0.797884583 : f32
    %13 = vector.broadcast %cst_7 : f32 to vector<8x256xf32>
    %14 = arith.mulf %13, %12 : vector<8x256xf32>
    %15 = math.tanh %14 : vector<8x256xf32>
    %cst_8 = arith.constant 1.000000e+00 : f32
    %16 = vector.broadcast %cst_8 : f32 to vector<8x256xf32>
    %17 = arith.addf %16, %15 : vector<8x256xf32>
    %18 = arith.mulf %9, %17 : vector<8x256xf32>
    %19 = arith.truncf %18 : vector<8x256xf32> to vector<8x256xbf16>
    %c0_9 = arith.constant 0 : index
    %c0_10 = arith.constant 0 : index
    %20 = vector.load %arg4[%c0_9, %c0_10] : memref<256x256xbf16, #tpu.memory_space<vmem>>, vector<256x256xbf16>
    %cst_11 = arith.constant dense<0.000000e+00> : vector<8x256xf32>
    %21 = tpu.matmul %19, %20, %cst_11 {dimension_numbers = #tpu.dot_dimension_numbers<[1], [0], [0], [1], [0, 0, 1, 1], [], []>} : vector<8x256xbf16>, vector<256x256xbf16>, vector<8x256xf32> -> vector<8x256xf32>
    %c0_12 = arith.constant 0 : index
    %c0_13 = arith.constant 0 : index
    %22 = vector.load %arg5[%c0_12, %c0_13] : memref<1x256xf32, #tpu.memory_space<vmem>>, vector<1x256xf32>
    %23 = vector.broadcast %22 : vector<1x256xf32> to vector<8x256xf32>
    %24 = arith.addf %21, %23 : vector<8x256xf32>
    %25 = arith.mulf %24, %24 : vector<8x256xf32>
    %26 = arith.mulf %25, %24 : vector<8x256xf32>
    %cst_14 = arith.constant 5.000000e-01 : f32
    %27 = vector.broadcast %cst_14 : f32 to vector<8x256xf32>
    %28 = arith.mulf %27, %24 : vector<8x256xf32>
    %cst_15 = arith.constant 4.471500e-02 : f32
    %29 = vector.broadcast %cst_15 : f32 to vector<8x256xf32>
    %30 = arith.mulf %29, %26 : vector<8x256xf32>
    %31 = arith.addf %24, %30 : vector<8x256xf32>
    %cst_16 = arith.constant 0.797884583 : f32
    %32 = vector.broadcast %cst_16 : f32 to vector<8x256xf32>
    %33 = arith.mulf %32, %31 : vector<8x256xf32>
    %34 = math.tanh %33 : vector<8x256xf32>
    %cst_17 = arith.constant 1.000000e+00 : f32
    %35 = vector.broadcast %cst_17 : f32 to vector<8x256xf32>
    %36 = arith.addf %35, %34 : vector<8x256xf32>
    %37 = arith.mulf %28, %36 : vector<8x256xf32>
    %38 = arith.truncf %37 : vector<8x256xf32> to vector<8x256xbf16>
    %c0_18 = arith.constant 0 : index
    %c0_19 = arith.constant 0 : index
    %39 = vector.load %arg6[%c0_18, %c0_19] : memref<256x256xbf16, #tpu.memory_space<vmem>>, vector<256x256xbf16>
    %cst_20 = arith.constant dense<0.000000e+00> : vector<8x256xf32>
    %40 = tpu.matmul %38, %39, %cst_20 {dimension_numbers = #tpu.dot_dimension_numbers<[1], [0], [0], [1], [0, 0, 1, 1], [], []>} : vector<8x256xbf16>, vector<256x256xbf16>, vector<8x256xf32> -> vector<8x256xf32>
    %c0_21 = arith.constant 0 : index
    %c0_22 = arith.constant 0 : index
    %41 = vector.load %arg7[%c0_21, %c0_22] : memref<1x256xf32, #tpu.memory_space<vmem>>, vector<1x256xf32>
    %42 = vector.broadcast %41 : vector<1x256xf32> to vector<8x256xf32>
    %43 = arith.addf %40, %42 : vector<8x256xf32>
    %44 = arith.mulf %43, %43 : vector<8x256xf32>
    %45 = arith.mulf %44, %43 : vector<8x256xf32>
    %cst_23 = arith.constant 5.000000e-01 : f32
    %46 = vector.broadcast %cst_23 : f32 to vector<8x256xf32>
    %47 = arith.mulf %46, %43 : vector<8x256xf32>
    %cst_24 = arith.constant 4.471500e-02 : f32
    %48 = vector.broadcast %cst_24 : f32 to vector<8x256xf32>
    %49 = arith.mulf %48, %45 : vector<8x256xf32>
    %50 = arith.addf %43, %49 : vector<8x256xf32>
    %cst_25 = arith.constant 0.797884583 : f32
    %51 = vector.broadcast %cst_25 : f32 to vector<8x256xf32>
    %52 = arith.mulf %51, %50 : vector<8x256xf32>
    %53 = math.tanh %52 : vector<8x256xf32>
    %cst_26 = arith.constant 1.000000e+00 : f32
    %54 = vector.broadcast %cst_26 : f32 to vector<8x256xf32>
    %55 = arith.addf %54, %53 : vector<8x256xf32>
    %56 = arith.mulf %47, %55 : vector<8x256xf32>
    %57 = arith.truncf %56 : vector<8x256xf32> to vector<8x256xbf16>
    %c0_27 = arith.constant 0 : index
    %c0_28 = arith.constant 0 : index
    %58 = vector.load %arg8[%c0_27, %c0_28] : memref<256x128xbf16, #tpu.memory_space<vmem>>, vector<256x128xbf16>
    %cst_29 = arith.constant dense<0.000000e+00> : vector<8x128xf32>
    %59 = tpu.matmul %57, %58, %cst_29 {dimension_numbers = #tpu.dot_dimension_numbers<[1], [0], [0], [1], [0, 0, 1, 1], [], []>} : vector<8x256xbf16>, vector<256x128xbf16>, vector<8x128xf32> -> vector<8x128xf32>
    %c0_30 = arith.constant 0 : index
    %c0_31 = arith.constant 0 : index
    %60 = vector.load %arg9[%c0_30, %c0_31] : memref<1x128xf32, #tpu.memory_space<vmem>>, vector<1x128xf32>
    %61 = vector.broadcast %60 : vector<1x128xf32> to vector<8x128xf32>
    %62 = arith.addf %59, %61 : vector<8x128xf32>
    %63 = math.tanh %62 : vector<8x128xf32>
    %c0_32 = arith.constant 0 : index
    %c0_33 = arith.constant 0 : index
    %64 = vector.load %arg10[%c0_32, %c0_33] : memref<1x128xf32, #tpu.memory_space<vmem>>, vector<1x128xf32>
    %65 = vector.broadcast %64 : vector<1x128xf32> to vector<8x128xf32>
    %66 = arith.mulf %63, %65 : vector<8x128xf32>
    %c0_34 = arith.constant 0 : index
    %c0_35 = arith.constant 0 : index
    %67 = vector.load %arg11[%c0_34, %c0_35] : memref<1x128xf32, #tpu.memory_space<vmem>>, vector<1x128xf32>
    %68 = vector.broadcast %67 : vector<1x128xf32> to vector<8x128xf32>
    %69 = arith.addf %66, %68 : vector<8x128xf32>
    %c0_36 = arith.constant 0 : index
    %c0_37 = arith.constant 0 : index
    %70 = vector.load %arg12[%c0_36, %c0_37] : memref<8x128xf32, #tpu.memory_space<vmem>>, vector<8x128xf32>
    tpu.vector_store %arg12[%c0_36, %c0_37], %69 {strides = array<i32>} : memref<8x128xf32, #tpu.memory_space<vmem>>, vector<8x128xf32>,
    return
  }
  func.func @transform_0(%arg0: i32) -> (i32, i32) {
    %c0_i32 = arith.constant 0 : i32
    %c0_i32_0 = arith.constant 0 : i32
    return %arg0, %c0_i32 : i32, i32
  }
  func.func @transform_1(%arg0: i32) -> (i32, i32) {
    %c0_i32 = arith.constant 0 : i32
    %c0_i32_0 = arith.constant 0 : i32
    %c0_i32_1 = arith.constant 0 : i32
    return %c0_i32, %c0_i32_0 : i32, i32
  }
  func.func @transform_2(%arg0: i32) -> (i32, i32) {
    %c0_i32 = arith.constant 0 : i32
    %c0_i32_0 = arith.constant 0 : i32
    %c0_i32_1 = arith.constant 0 : i32
    return %c0_i32, %c0_i32_0 : i32, i32
  }
  func.func @transform_3(%arg0: i32) -> (i32, i32) {
    %c0_i32 = arith.constant 0 : i32
    %c0_i32_0 = arith.constant 0 : i32
    %c0_i32_1 = arith.constant 0 : i32
    return %c0_i32, %c0_i32_0 : i32, i32
  }
  func.func @transform_4(%arg0: i32) -> (i32, i32) {
    %c0_i32 = arith.constant 0 : i32
    %c0_i32_0 = arith.constant 0 : i32
    %c0_i32_1 = arith.constant 0 : i32
    return %c0_i32, %c0_i32_0 : i32, i32
  }
  func.func @transform_5(%arg0: i32) -> (i32, i32) {
    %c0_i32 = arith.constant 0 : i32
    %c0_i32_0 = arith.constant 0 : i32
    %c0_i32_1 = arith.constant 0 : i32
    return %c0_i32, %c0_i32_0 : i32, i32
  }
  func.func @transform_6(%arg0: i32) -> (i32, i32) {
    %c0_i32 = arith.constant 0 : i32
    %c0_i32_0 = arith.constant 0 : i32
    %c0_i32_1 = arith.constant 0 : i32
    return %c0_i32, %c0_i32_0 : i32, i32
  }
  func.func @transform_7(%arg0: i32) -> (i32, i32) {
    %c0_i32 = arith.constant 0 : i32
    %c0_i32_0 = arith.constant 0 : i32
    %c0_i32_1 = arith.constant 0 : i32
    return %c0_i32, %c0_i32_0 : i32, i32
  }
  func.func @transform_8(%arg0: i32) -> (i32, i32) {
    %c0_i32 = arith.constant 0 : i32
    %c0_i32_0 = arith.constant 0 : i32
    %c0_i32_1 = arith.constant 0 : i32
    return %c0_i32, %c0_i32_0 : i32, i32
  }
  func.func @transform_9(%arg0: i32) -> (i32, i32) {
    %c0_i32 = arith.constant 0 : i32
    %c0_i32_0 = arith.constant 0 : i32
    %c0_i32_1 = arith.constant 0 : i32
    return %c0_i32, %c0_i32_0 : i32, i32
  }
  func.func @transform_10(%arg0: i32) -> (i32, i32) {
    %c0_i32 = arith.constant 0 : i32
    %c0_i32_0 = arith.constant 0 : i32
    %c0_i32_1 = arith.constant 0 : i32
    return %c0_i32, %c0_i32_0 : i32, i32
  }
  func.func @transform_11(%arg0: i32) -> (i32, i32) {
    %c0_i32 = arith.constant 0 : i32
    %c0_i32_0 = arith.constant 0 : i32
    return %arg0, %c0_i32 : i32, i32
  }
}

</mosaic_0001>

<bundles_post_ra>
// kernel: tpu_custom_call.1
= control target key start
LH: loop header
LB: loop body
LE: loop exit
PB: predicated region body
PF: predicated region fallthrough
CT: control target
= control target key end

     0   :  { %16 = vsyncpa [#allocation3], 0  ;;  %s1428_s0 = inlined_call_operand.hbm [shape: bf16[8,8], index: 0, kind: input, shape index: {}]   ;;  %s1429_s1 = inlined_call_operand.hbm [shape: bf16[8,256], index: 1, kind: input, shape index: {}]   ;;  %s1430_s2 = inlined_call_operand.vmem [shape: f32[1,256], index: 2, kind: input, shape index: {}]   ;;  %s1431_s3 = inlined_call_operand.hbm [shape: bf16[256,256], index: 3, kind: input, shape index: {}]   ;;  %s1432_s4 = inlined_call_operand.vmem [shape: f32[1,256], index: 4, kind: input, shape index: {}]   ;;  %s1433_s5 = inlined_call_operand.hbm [shape: bf16[256,256], index: 5, kind: input, shape index: {}]   ;;  %s1434_s6 = inlined_call_operand.vmem [shape: f32[1,256], index: 6, kind: input, shape index: {}]   ;;  %s1435_s7 = inlined_call_operand.hbm [shape: bf16[256,128], index: 7, kind: input, shape index: {}]   ;;  %s1436_s8 = inlined_call_operand.vmem [shape: f32[1,128], index: 8, kind: input, shape index: {}]   ;;  %s1437_s9 = inlined_call_operand.vmem [shape: f32[1,128], index: 9, kind: input, shape index: {}]   ;;  %s1438_s10 = inlined_call_operand.vmem [shape: f32[1,128], index: 10, kind: input, shape index: {}]   ;;  %s1439_s11 = inlined_call_operand.hbm [shape: f32[8,128], index: 11, kind: output, shape index: {}]  }
   0x1   :  { %17 = vsyncpa [#allocation6], 0 }
   0x2   :  { %18 = vsyncpa [#allocation9], 0 }
   0x3   :  { %19 = vsyncpa [#allocation4], 0  ;;  %s1311_s17 = smov [#allocation5]  }
   0x4   :  { %s36_s18 = sshll.u32 %s1311_s17, 4  ;;  %s37_s18 = int_to_ptr.vmem [resolvable:$true] %s36_s18 }
   0x5   :  { %s1191_s19 = scalar_lea.vmem %s37_s18, 128  ;;  %p1196_p1 = scmp.lt.s32.totalorder %s37_s18, %s37_s18 }
   0x6   :  { %p1192_p0 = scmp.ne.s32.totalorder %s37_s18, %s1191_s19  ;;  %p1197_p2 = scmp.lt.s32.totalorder %s1191_s19, %s1191_s19 }
   0x8   :  { %p1198_p3 = por %p1197_p2, %p1196_p1 }
   0xa   :  { %p1199_p4 = pnand %p1198_p3, %p1192_p0 }
   0xc   :  { %1202 = shalt.err (!%p1199_p4)
}
   0xd   :  { %39 = dma.hbm_to_vmem [thread:$0]  %s1429_s1, 128, %s37_s18, [#allocation6]  }
   0xe   :  { %s1312_s22 = smov [#allocation8]   ;;  %s1313_s24 = smov [#allocation2]  }
   0xf   :  { %s61_s23 = sshll.u32 %s1312_s22, 4  ;;  %s26_s25 = sshll.u32 %s1313_s24, 4  ;;  %s62_s23 = int_to_ptr.vmem [resolvable:$true] %s61_s23  ;;  %s27_s25 = int_to_ptr.vmem [resolvable:$true] %s26_s25 }
  0x10   :  { %s1211_s26 = scalar_lea.vmem %s62_s23, 4096  ;;  %p1216_p6 = scmp.lt.s32.totalorder %s62_s23, %s62_s23 }
  0x11   :  { %p1212_p5 = scmp.ne.s32.totalorder %s62_s23, %s1211_s26  ;;  %p1217_p7 = scmp.lt.s32.totalorder %s1211_s26, %s1211_s26 }
  0x13   :  { %p1218_p8 = por %p1217_p7, %p1216_p6 }
  0x15   :  { %p1219_p9 = pnand %p1218_p8, %p1212_p5 }
  0x17   :  { %1222 = shalt.err (!%p1219_p9)
}
  0x18   :  { %s1314_s27 = smov 128   ;;  %s1315_s28 = smov 8  }
  0x19   :  { %67 = dma.hbm_to_vmem [thread:$0]  %s1433_s5, 4096, %s62_s23, [#allocation9], %s1314_s27, %s1314_s27, %s1315_s28  }
  0x1a   :  { %s1231_s1 = scalar_lea.vmem %s27_s25, 64  ;;  %p1236_p11 = scmp.lt.s32.totalorder %s27_s25, %s27_s25 }
  0x1b   :  { %p1232_p10 = scmp.ne.s32.totalorder %s27_s25, %s1231_s1  ;;  %p1237_p12 = scmp.lt.s32.totalorder %s1231_s1, %s1231_s1 }
  0x1d   :  { %p1238_p13 = por %p1237_p12, %p1236_p11 }
  0x1f   :  { %p1239_p0 = pnand %p1238_p13, %p1232_p10 }
  0x21   :  { %1242 = shalt.err (!%p1239_p0)
}
  0x22   :  { %29 = dma.hbm_to_vmem [thread:$0]  %s1428_s0, 64, %s27_s25, [#allocation3]  }
  0x23   :  { %s1316_s14 = smov [#allocation7]   ;;  %s1317_s16 = smov [#allocation10]  }
  0x24   :  { %s47_s15 = sshll.u32 %s1316_s14, 4  ;;  %s75_s17 = sshll.u32 %s1317_s16, 4  ;;  %s48_s15 = int_to_ptr.vmem [resolvable:$true] %s47_s15  ;;  %s76_s17 = int_to_ptr.vmem [resolvable:$true] %s75_s17 }
  0x25   :  { %s1251_s18 = scalar_lea.vmem %s48_s15, 4096  ;;  %p1256_p2 = scmp.lt.s32.totalorder %s48_s15, %s48_s15 }
  0x26   :  { %p1252_p1 = scmp.ne.s32.totalorder %s48_s15, %s1251_s18  ;;  %p1257_p3 = scmp.lt.s32.totalorder %s1251_s18, %s1251_s18 }
  0x28   :  { %p1258_p4 = por %p1257_p3, %p1256_p2 }
  0x2a   :  { %p1259_p5 = pnand %p1258_p4, %p1252_p1 }
  0x2c   :  { %1262 = shalt.err (!%p1259_p5)
}
  0x2d   :  { %53 = dma.hbm_to_vmem [thread:$0]  %s1431_s3, 4096, %s48_s15, [#allocation6], %s1314_s27, %s1314_s27, %s1315_s28  }
  0x2e   :  { %s1271_s20 = scalar_lea.vmem %s76_s17, 2048  ;;  %p1276_p7 = scmp.lt.s32.totalorder %s76_s17, %s76_s17 }
  0x2f   :  { %p1272_p6 = scmp.ne.s32.totalorder %s76_s17, %s1271_s20  ;;  %p1277_p8 = scmp.lt.s32.totalorder %s1271_s20, %s1271_s20 }
  0x31   :  { %p1278_p9 = por %p1277_p8, %p1276_p7 }
  0x33   :  { %p1279_p10 = pnand %p1278_p9, %p1272_p6 }
  0x35   :  { %1282 = shalt.err (!%p1279_p10)
}
  0x36   :  { %s1318_s0 = smov 64   ;;  %s1319_s21 = smov 4  }
  0x37   :  { %81 = dma.hbm_to_vmem [thread:$0]  %s1435_s7, 2048, %s76_s17, [#allocation9], %s1318_s0, %s1318_s0, %s1319_s21  }
  0x38   :  { %1303 = dma.done.wait [#allocation3], 64  }
  0x39   :  { %1304 = vsyncadd [#allocation3], 4294967232 }
  0x3a   :  { %1305 = dma.done.wait [#allocation6], 4224  }
  0x3b   :  { %1306 = vsyncadd [#allocation6], 4294963072 }
  0x3c   :  { %1307 = dma.done.wait [#allocation9], 6144  }
  0x3d   :  { %1308 = vsyncadd [#allocation9], 4294961152  ;;  %v1320_v0 = vmov 0   ;;  %v105_v1 = vld [vmem:[#allocation5] sm:$0xff]  ;;  %vm127_vm0 = vcmask 1043456   ;;  %vm123_vm1 = vcmask 64512   ;;  %v108_v52 = vlaneseq }
  0x3e   :  { %166 = vmatprep.mubr.bf16.mxu0 %v1320_v0  ;;  %v936_v2 = vcombine.high %v105_v1, %v105_v1  ;;  %v935_v3 = vcombine.low %v105_v1, %v105_v1  ;;  %v1057_v4 = vld [vmem:[#allocation7 + $0x74] ss:$8 sps:$4 sm:$0xff]   ;;  %v1059_v5 = vld [vmem:[#allocation7 + $0x70] ss:$8 sps:$4 sm:$0xff]   ;;  %v1060_v6 = vld [vmem:[#allocation7 + $0x64] ss:$8 sps:$4 sm:$0xff]  }
  0x3f   :  { %399 = vmatprep.subr.bf16.mxu1 %v1057_v4  ;;  %v104_v8 = vld [vmem:[#allocation2] sm:$0xf]  ;;  %v1062_v9 = vld [vmem:[#allocation7 + $0x60] ss:$8 sps:$4 sm:$0xff]   ;;  %v1065_v11 = vld [vmem:[#allocation7 + $0x50] ss:$8 sps:$4 sm:$0xff]  }
  0x40   :  { %937 = vmatprep.subr.msk.bf16.mxu0 %vm127_vm0, %v936_v2  ;;  %v129_v7 = vsel %vm127_vm0, %v935_v3, 0  ;;  %400 = vmatpush1.bf16.msra.mxu1 %v1059_v5  ;;  %v1063_v10 = vld [vmem:[#allocation7 + $0x54] ss:$8 sps:$4 sm:$0xff]   ;;  %v1066_v12 = vld [vmem:[#allocation7 + $0x44] ss:$8 sps:$4 sm:$0xff]   ;;  %v109_v53 = vshrl.u32 %v108_v52, 7 }
  0x41   :  { %149 = vmatpush1.bf16.msra.mxu0 %v129_v7  ;;  %401 = vmatprep.subr.bf16.mxu1 %v1060_v6  ;;  %v1068_v13 = vld [vmem:[#allocation7 + $0x40] ss:$8 sps:$4 sm:$0xff]   ;;  %v1069_v14 = vld [vmem:[#allocation7 + $0x34] ss:$8 sps:$4 sm:$0xff]   ;;  %v1071_v15 = vld [vmem:[#allocation7 + $0x30] ss:$8 sps:$4 sm:$0xff]  }
  0x42   :  { %v1072_v16 = vld [vmem:[#allocation7 + $0x24] ss:$8 sps:$4 sm:$0xff]   ;;  %v1074_v17 = vld [vmem:[#allocation7 + $0x20] ss:$8 sps:$4 sm:$0xff]   ;;  %v1075_v18 = vld [vmem:[#allocation7 + $0x14] ss:$8 sps:$4 sm:$0xff]  }
  0x43   :  { %v1077_v19 = vld [vmem:[#allocation7 + $0x10] ss:$8 sps:$4 sm:$0xff]   ;;  %v1078_v20 = vld [vmem:[#allocation7 + $0x4] ss:$8 sps:$4 sm:$0xff]   ;;  %v1080_v21 = vld [vmem:[#allocation7] ss:$8 sps:$4 sm:$0xff]  }
  0x44   :  { %938 = vmatmul.mubr.msk.bf16.vlgmr.msra.gmra.mxu0 %vm123_vm1, %v104_v8  ;;  %402 = vmatpush1.bf16.msra.mxu1 %v1062_v9  ;;  %v1081_v22 = vld [vmem:[#allocation7 + $0xf4] ss:$8 sps:$4 sm:$0xff]   ;;  %v1083_v23 = vld [vmem:[#allocation7 + $0xf0] ss:$8 sps:$4 sm:$0xff]   ;;  %v1084_v24 = vld [vmem:[#allocation7 + $0xe4] ss:$8 sps:$4 sm:$0xff]  }
  0x45   :  { %403 = vmatprep.subr.bf16.mxu1 %v1063_v10  ;;  %v1086_v25 = vld [vmem:[#allocation7 + $0xe0] ss:$8 sps:$4 sm:$0xff]   ;;  %v1087_v26 = vld [vmem:[#allocation7 + $0xd4] ss:$8 sps:$4 sm:$0xff]   ;;  %v1089_v27 = vld [vmem:[#allocation7 + $0xd0] ss:$8 sps:$4 sm:$0xff]  }
  0x46   :  { %v1090_v28 = vld [vmem:[#allocation7 + $0xc4] ss:$8 sps:$4 sm:$0xff]   ;;  %v1092_v29 = vld [vmem:[#allocation7 + $0xc0] ss:$8 sps:$4 sm:$0xff]   ;;  %v1093_v30 = vld [vmem:[#allocation7 + $0xb4] ss:$8 sps:$4 sm:$0xff]  }
  0x47   :  { %v1095_v31 = vld [vmem:[#allocation7 + $0xb0] ss:$8 sps:$4 sm:$0xff]   ;;  %v1096_v32 = vld [vmem:[#allocation7 + $0xa4] ss:$8 sps:$4 sm:$0xff]   ;;  %v1098_v33 = vld [vmem:[#allocation7 + $0xa0] ss:$8 sps:$4 sm:$0xff]  }
  0x48   :  { %404 = vmatpush1.bf16.msra.mxu1 %v1065_v11  ;;  %v1099_v34 = vld [vmem:[#allocation7 + $0x94] ss:$8 sps:$4 sm:$0xff]   ;;  %v1101_v35 = vld [vmem:[#allocation7 + $0x90] ss:$8 sps:$4 sm:$0xff]   ;;  %v1102_v36 = vld [vmem:[#allocation7 + $0x84] ss:$8 sps:$4 sm:$0xff]  }
  0x49   :  { %405 = vmatprep.subr.bf16.mxu1 %v1066_v12  ;;  %v1104_v37 = vld [vmem:[#allocation7 + $0x80] ss:$8 sps:$4 sm:$0xff]   ;;  %v1105_v38 = vld [vmem:[#allocation8 + $0x70] ss:$8 sps:$4 sm:$0xff]   ;;  %v1107_v39 = vld [vmem:[#allocation8 + $0x74] ss:$8 sps:$4 sm:$0xff]  }
  0x4a   :  { %v1110_v40 = vld [vmem:[#allocation8 + $0x64] ss:$8 sps:$4 sm:$0xff]   ;;  %664 = vmatprep.subr.bf16.mxu0 %v1107_v39  ;;  %v1108_v41 = vld [vmem:[#allocation8 + $0x60] ss:$8 sps:$4 sm:$0xff]   ;;  %v1113_v42 = vld [vmem:[#allocation8 + $0x54] ss:$8 sps:$4 sm:$0xff]  }
  0x4b   :  { %665 = vmatpush1.bf16.msra.mxu0 %v1105_v38  ;;  %v1111_v43 = vld [vmem:[#allocation8 + $0x50] ss:$8 sps:$4 sm:$0xff]   ;;  %v1116_v44 = vld [vmem:[#allocation8 + $0x44] ss:$8 sps:$4 sm:$0xff]   ;;  %v1114_v45 = vld [vmem:[#allocation8 + $0x40] ss:$8 sps:$4 sm:$0xff]  }
  0x4c   :  { %406 = vmatpush1.bf16.msra.mxu1 %v1068_v13  ;;  %666 = vmatprep.subr.bf16.mxu0 %v1110_v40  ;;  %v1119_v46 = vld [vmem:[#allocation8 + $0x34] ss:$8 sps:$4 sm:$0xff]   ;;  %v1117_v47 = vld [vmem:[#allocation8 + $0x30] ss:$8 sps:$4 sm:$0xff]   ;;  %v1122_v48 = vld [vmem:[#allocation8 + $0x24] ss:$8 sps:$4 sm:$0xff]  }
  0x4d   :  { %407 = vmatprep.subr.bf16.mxu1 %v1069_v14  ;;  %v1120_v49 = vld [vmem:[#allocation8 + $0x20] ss:$8 sps:$4 sm:$0xff]   ;;  %v1125_v50 = vld [vmem:[#allocation8 + $0x14] ss:$8 sps:$4 sm:$0xff]   ;;  %v1123_v51 = vld [vmem:[#allocation8 + $0x10] ss:$8 sps:$4 sm:$0xff]  }
  0x4e   :  { %v1397_v54 = vsub.s32 0, %v109_v53  ;;  %v106_v55 = vld [vmem:[%s1430_s2] sm:$0x3]  ;;  %v1402_v56 = vsub.s32 1, %v109_v53  ;;  %v1150_v38 = vld [vmem:[#allocation8 + $0x80] ss:$8 sps:$4 sm:$0xff]  }
  0x4f   :  { %667 = vmatpush1.bf16.msra.mxu0 %v1108_v41  ;;  %v227_v39 = vld [vmem:[%s1432_s4] sm:$0x3]  ;;  %s1321_s1 = smov [#allocation11]  }
  0x50   :  { %408 = vmatpush1.bf16.msra.mxu1 %v1071_v15  ;;  %668 = vmatprep.subr.bf16.mxu0 %v1113_v42  ;;  %v111_v57 = vrot.slane %v106_v55, %v1397_v54  ;;  %v115_v58 = vrot.slane %v106_v55, %v1402_v56  ;;  %v232_v40 = vrot.slane %v227_v39, %v1397_v54  ;;  %s924_s12 = sshll.u32 %s1321_s1, 4  ;;  %s925_s12 = int_to_ptr.vmem [resolvable:$true] %s924_s12 }
  0x51   :  { %409 = vmatprep.subr.bf16.mxu1 %v1072_v16  ;;  %v236_v41 = vrot.slane %v227_v39, %v1402_v56  ;;  %p1288_p12 = scmp.lt.s32.totalorder %s925_s12, %s925_s12 }
  0x53   :  { %669 = vmatpush1.bf16.msra.mxu0 %v1111_v43 }
  0x54   :  { %410 = vmatpush1.bf16.msra.mxu1 %v1074_v17  ;;  %670 = vmatprep.subr.bf16.mxu0 %v1116_v44 }
  0x55   :  { %411 = vmatprep.subr.bf16.mxu1 %v1075_v18 }
  0x57   :  { %671 = vmatpush1.bf16.msra.mxu0 %v1114_v45 }
  0x58   :  { %412 = vmatpush1.bf16.msra.mxu1 %v1077_v19  ;;  %672 = vmatprep.subr.bf16.mxu0 %v1119_v46 }
  0x59   :  { %413 = vmatprep.subr.bf16.mxu1 %v1078_v20 }
  0x5b   :  { %673 = vmatpush1.bf16.msra.mxu0 %v1117_v47 }
  0x5c   :  { %414 = vmatpush1.bf16.msra.mxu1 %v1080_v21  ;;  %674 = vmatprep.subr.bf16.mxu0 %v1122_v48  ;;  %v1128_v21 = vld [vmem:[#allocation8 + $0x4] ss:$8 sps:$4 sm:$0xff]  }
  0x5d   :  { %415 = vmatprep.subr.bf16.mxu1 %v1081_v22  ;;  %v1126_v22 = vld [vmem:[#allocation8] ss:$8 sps:$4 sm:$0xff]  }
  0x5f   :  { %675 = vmatpush1.bf16.msra.mxu0 %v1120_v49 }
  0x60   :  { %416 = vmatpush2.bf16.msra.mxu1 %v1083_v23  ;;  %676 = vmatprep.subr.bf16.mxu0 %v1125_v50  ;;  %v1131_v23 = vld [vmem:[#allocation8 + $0xf4] ss:$8 sps:$4 sm:$0xff]  }
  0x61   :  { %417 = vmatprep.subr.bf16.mxu1 %v1084_v24  ;;  %v1129_v24 = vld [vmem:[#allocation8 + $0xf0] ss:$8 sps:$4 sm:$0xff]  }
  0x63   :  { %677 = vmatpush1.bf16.msra.mxu0 %v1123_v51 }
  0x64   :  { %418 = vmatpush2.bf16.msra.mxu1 %v1086_v25  ;;  %678 = vmatprep.subr.bf16.mxu0 %v1128_v21  ;;  %v1134_v25 = vld [vmem:[#allocation8 + $0xe4] ss:$8 sps:$4 sm:$0xff]  }
  0x65   :  { %419 = vmatprep.subr.bf16.mxu1 %v1087_v26  ;;  %v1132_v26 = vld [vmem:[#allocation8 + $0xe0] ss:$8 sps:$4 sm:$0xff]  }
  0x66   :  { %v1168_v21 = vld [vmem:[#allocation10] sm:$0xff]  }
  0x67   :  { %679 = vmatpush1.bf16.msra.mxu0 %v1126_v22  ;;  %v492_v22 = vld [vmem:[%s1434_s6] sm:$0x3] }
  0x68   :  { %420 = vmatpush2.bf16.msra.mxu1 %v1089_v27  ;;  %680 = vmatprep.subr.bf16.mxu0 %v1131_v23  ;;  %v1137_v27 = vld [vmem:[#allocation8 + $0xd4] ss:$8 sps:$4 sm:$0xff]   ;;  %v497_v23 = vrot.slane %v492_v22, %v1397_v54 }
  0x69   :  { %421 = vmatprep.subr.bf16.mxu1 %v1090_v28  ;;  %v1135_v28 = vld [vmem:[#allocation8 + $0xd0] ss:$8 sps:$4 sm:$0xff]  }
  0x6b   :  { %681 = vmatpush2.bf16.msra.mxu0 %v1129_v24  ;;  %v501_v24 = vrot.slane %v492_v22, %v1402_v56 }
  0x6c   :  { %422 = vmatpush2.bf16.msra.mxu1 %v1092_v29  ;;  %682 = vmatprep.subr.bf16.mxu0 %v1134_v25  ;;  %v1140_v29 = vld [vmem:[#allocation8 + $0xc4] ss:$8 sps:$4 sm:$0xff]  }
  0x6d   :  { %423 = vmatprep.subr.bf16.mxu1 %v1093_v30  ;;  %v1138_v30 = vld [vmem:[#allocation8 + $0xc0] ss:$8 sps:$4 sm:$0xff]  }
  0x6f   :  { %683 = vmatpush2.bf16.msra.mxu0 %v1132_v26 }
  0x70   :  { %424 = vmatpush2.bf16.msra.mxu1 %v1095_v31  ;;  %684 = vmatprep.subr.bf16.mxu0 %v1137_v27  ;;  %v1143_v31 = vld [vmem:[#allocation8 + $0xb4] ss:$8 sps:$4 sm:$0xff]  }
  0x71   :  { %425 = vmatprep.subr.bf16.mxu1 %v1096_v32  ;;  %v1141_v32 = vld [vmem:[#allocation8 + $0xb0] ss:$8 sps:$4 sm:$0xff]  }
  0x73   :  { %685 = vmatpush2.bf16.msra.mxu0 %v1135_v28 }
  0x74   :  { %426 = vmatpush2.bf16.msra.mxu1 %v1098_v33  ;;  %686 = vmatprep.subr.bf16.mxu0 %v1140_v29  ;;  %v1146_v33 = vld [vmem:[#allocation8 + $0xa4] ss:$8 sps:$4 sm:$0xff]  }
  0x75   :  { %427 = vmatprep.subr.bf16.mxu1 %v1099_v34  ;;  %v1144_v34 = vld [vmem:[#allocation8 + $0xa0] ss:$8 sps:$4 sm:$0xff]  }
  0x77   :  { %687 = vmatpush2.bf16.msra.mxu0 %v1138_v30 }
  0x78   :  { %428 = vmatpush2.bf16.msra.mxu1 %v1101_v35  ;;  %688 = vmatprep.subr.bf16.mxu0 %v1143_v31  ;;  %v1149_v35 = vld [vmem:[#allocation8 + $0x94] ss:$8 sps:$4 sm:$0xff]  }
  0x79   :  { %429 = vmatprep.subr.bf16.mxu1 %v1102_v36  ;;  %v1147_v36 = vld [vmem:[#allocation8 + $0x90] ss:$8 sps:$4 sm:$0xff]  }
  0x7b   :  { %689 = vmatpush2.bf16.msra.mxu0 %v1141_v32 }
  0x7c   :  { %430 = vmatpush2.bf16.msra.mxu1 %v1104_v37  ;;  %690 = vmatprep.subr.bf16.mxu0 %v1146_v33  ;;  %v1152_v37 = vld [vmem:[#allocation8 + $0x84] ss:$8 sps:$4 sm:$0xff]  }
  0x7f   :  { %691 = vmatpush2.bf16.msra.mxu0 %v1144_v34 }
  0x80   :  { %692 = vmatprep.subr.bf16.mxu0 %v1149_v35 }
  0x83   :  { %693 = vmatpush2.bf16.msra.mxu0 %v1147_v36 }
  0x84   :  { %694 = vmatprep.subr.bf16.mxu0 %v1152_v37 }
  0x87   :  { %695 = vmatpush2.bf16.msra.mxu0 %v1150_v38 }
 0x104   :  { %v168_v59 = vpop.f32.mrf.mxu0 }
 0x105   :  { %v169_v60 = vadd.f32 %v168_v59, %v111_v57 }
 0x106   :  { %v170_v61 = vpop.f32.mrf.mxu0 }
 0x107   :  { %v175_v62 = vmul.f32 %v169_v60, %v169_v60  ;;  %v171_v63 = vadd.f32 %v170_v61, %v115_v58  ;;  %v179_v14 = vmul.f32 0.5, %v169_v60 }
 0x108   :  { %v172_v0 = vpop.f32.mrf.mxu0 }
 0x109   :  { %v177_v1 = vmul.f32 %v175_v62, %v169_v60  ;;  %v176_v2 = vmul.f32 %v171_v63, %v171_v63  ;;  %v180_v15 = vmul.f32 0.5, %v171_v63 }
 0x10a   :  { %v173_v3 = vpop.f32.mrf.mxu0 }
 0x10b   :  { %v181_v4 = vmul.f32 0.044715, %v177_v1  ;;  %v178_v5 = vmul.f32 %v176_v2, %v171_v63 }
 0x10d   :  { %v183_v6 = vadd.f32 %v181_v4, %v169_v60  ;;  %v182_v7 = vmul.f32 0.044715, %v178_v5 }
 0x10f   :  { %v185_v8 = vmul.f32 0.7978846, %v183_v6  ;;  %v184_v9 = vadd.f32 %v182_v7, %v171_v63  ;;  %v1153_v6 = vld [vmem:[#allocation10 + $0x78] sm:$0xff]  }
 0x110   :  { %v1154_v7 = vld [vmem:[#allocation10 + $0x38] sm:$0xff]   ;;  %1022 = vmatprep.subr.bf16.mxu1 %v1153_v6 }
 0x111   :  { %1169 = vtanh.f32 %v185_v8  ;;  %v186_v10 = vmul.f32 0.7978846, %v184_v9  ;;  %v1155_v8 = vld [vmem:[#allocation10 + $0x70] sm:$0xff]  }
 0x112   :  { %v1156_v9 = vld [vmem:[#allocation10 + $0x30] sm:$0xff]  }
 0x113   :  { %1171 = vtanh.f32 %v186_v10  ;;  %v1157_v10 = vld [vmem:[#allocation10 + $0x68] sm:$0xff]  }
 0x11e   :  { %v1170_v11 = vpop.eup %1169 }
 0x11f   :  { %v189_v12 = vadd.f32 1.0, %v1170_v11  ;;  %v1158_v11 = vld [vmem:[#allocation10 + $0x28] sm:$0xff]  }
 0x120   :  { %v1172_v13 = vpop.eup %1171 }
 0x121   :  { %v190_v16 = vadd.f32 1.0, %v1172_v13  ;;  %v191_v17 = vmul.f32 %v189_v12, %v179_v14  ;;  %v1159_v12 = vld [vmem:[#allocation10 + $0x60] sm:$0xff]   ;;  %v1161_v14 = vld [vmem:[#allocation10 + $0x58] sm:$0xff]  }
 0x122   :  { %v1160_v13 = vld [vmem:[#allocation10 + $0x20] sm:$0xff]  }
 0x123   :  { %v192_v18 = vmul.f32 %v190_v16, %v180_v15  ;;  %v193_v20 = vpack.c.bf16 %v191_v17, %v191_v17  ;;  %v1162_v15 = vld [vmem:[#allocation10 + $0x18] sm:$0xff]   ;;  %v1163_v16 = vld [vmem:[#allocation10 + $0x50] sm:$0xff]  }
 0x124   :  { %v1164_v17 = vld [vmem:[#allocation10 + $0x10] sm:$0xff]  }
 0x125   :  { %v194_v19 = vpack.c.bf16 %v192_v18, %v192_v18  ;;  %v1165_v18 = vld [vmem:[#allocation10 + $0x48] sm:$0xff]  }
 0x127   :  { %431 = vmatprep.mubr.bf16.mxu1 %v194_v19  ;;  %v1166_v19 = vld [vmem:[#allocation10 + $0x8] sm:$0xff]  }
 0x128   :  { %432 = vmatmul.mubr.bf16.vlgmr.msra.gmra.mxu1 %v193_v20  ;;  %v1167_v20 = vld [vmem:[#allocation10 + $0x40] sm:$0xff]  }
 0x129   :  { %1023 = vmatpush3.bf16.msra.mxu1 %v1154_v7 }
 0x12a   :  { %1024 = vmatprep.subr.bf16.mxu1 %v1155_v8 }
 0x12d   :  { %1025 = vmatpush3.bf16.msra.mxu1 %v1156_v9 }
 0x12e   :  { %1026 = vmatprep.subr.bf16.mxu1 %v1157_v10 }
 0x131   :  { %1027 = vmatpush3.bf16.msra.mxu1 %v1158_v11 }
 0x132   :  { %1028 = vmatprep.subr.bf16.mxu1 %v1159_v12 }
 0x135   :  { %1029 = vmatpush3.bf16.msra.mxu1 %v1160_v13 }
 0x136   :  { %1030 = vmatprep.subr.bf16.mxu1 %v1161_v14 }
 0x139   :  { %1031 = vmatpush3.bf16.msra.mxu1 %v1162_v15 }
 0x13a   :  { %1032 = vmatprep.subr.bf16.mxu1 %v1163_v16 }
 0x13d   :  { %1033 = vmatpush3.bf16.msra.mxu1 %v1164_v17 }
 0x13e   :  { %1034 = vmatprep.subr.bf16.mxu1 %v1165_v18 }
 0x141   :  { %1035 = vmatpush3.bf16.msra.mxu1 %v1166_v19 }
 0x142   :  { %1036 = vmatprep.subr.bf16.mxu1 %v1167_v20 }
 0x145   :  { %1037 = vmatpush3.bf16.msra.mxu1 %v1168_v21 }
 0x1e8   :  { %v433_v42 = vpop.f32.mrf.mxu1 }
 0x1e9   :  { %v434_v43 = vadd.f32 %v433_v42, %v232_v40 }
 0x1ea   :  { %v435_v44 = vpop.f32.mrf.mxu1 }
 0x1eb   :  { %v440_v45 = vmul.f32 %v434_v43, %v434_v43  ;;  %v436_v46 = vadd.f32 %v435_v44, %v236_v41  ;;  %v444_v63 = vmul.f32 0.5, %v434_v43 }
 0x1ec   :  { %v437_v47 = vpop.f32.mrf.mxu1 }
 0x1ed   :  { %v442_v48 = vmul.f32 %v440_v45, %v434_v43  ;;  %v441_v49 = vmul.f32 %v436_v46, %v436_v46  ;;  %v445_v0 = vmul.f32 0.5, %v436_v46 }
 0x1ee   :  { %v438_v50 = vpop.f32.mrf.mxu1 }
 0x1ef   :  { %v446_v51 = vmul.f32 0.044715, %v442_v48  ;;  %v443_v52 = vmul.f32 %v441_v49, %v436_v46  ;;  %v1003_v50 = vld [vmem:[%s1436_s8] ss:$0 sm:$0xff]  ;;  %s1283_s8 = scalar_lea.vmem %s925_s12, 128 }
 0x1f0   :  { %p1284_p11 = scmp.ne.s32.totalorder %s925_s12, %s1283_s8  ;;  %p1289_p13 = scmp.lt.s32.totalorder %s1283_s8, %s1283_s8 }
 0x1f1   :  { %v448_v53 = vadd.f32 %v446_v51, %v434_v43  ;;  %v447_v55 = vmul.f32 0.044715, %v443_v52 }
 0x1f2   :  { %p1290_p0 = por %p1289_p13, %p1288_p12 }
 0x1f3   :  { %v450_v57 = vmul.f32 0.7978846, %v448_v53  ;;  %v449_v58 = vadd.f32 %v447_v55, %v436_v46 }
 0x1f4   :  { %p1291_p1 = pnand %p1290_p0, %p1284_p11 }
 0x1f5   :  { %1173 = vtanh.f32 %v450_v57  ;;  %v451_v59 = vmul.f32 0.7978846, %v449_v58  ;;  %v1020_v58 = vld [vmem:[%s1437_s9] ss:$0 sm:$0xff] }
 0x1f7   :  { %1175 = vtanh.f32 %v451_v59 }
 0x202   :  { %v1174_v60 = vpop.eup %1173 }
 0x203   :  { %v454_v61 = vadd.f32 1.0, %v1174_v60  ;;  %v1021_v60 = vld [vmem:[%s1438_s10] ss:$0 sm:$0xff] }
 0x204   :  { %v1176_v62 = vpop.eup %1175 }
 0x205   :  { %v455_v1 = vadd.f32 1.0, %v1176_v62  ;;  %v456_v2 = vmul.f32 %v454_v61, %v444_v63 }
 0x207   :  { %v457_v3 = vmul.f32 %v455_v1, %v445_v0  ;;  %v458_v5 = vpack.c.bf16 %v456_v2, %v456_v2 }
 0x209   :  { %v459_v4 = vpack.c.bf16 %v457_v3, %v457_v3 }
 0x20b   :  { %696 = vmatprep.mubr.bf16.mxu0 %v459_v4 }
 0x20c   :  { %697 = vmatmul.mubr.bf16.vlgmr.msra.gmra.mxu0 %v458_v5 }
 0x2cc   :  { %v698_v25 = vpop.f32.mrf.mxu0 }
 0x2cd   :  { %v699_v26 = vadd.f32 %v698_v25, %v497_v23 }
 0x2ce   :  { %v700_v27 = vpop.f32.mrf.mxu0 }
 0x2cf   :  { %v705_v28 = vmul.f32 %v699_v26, %v699_v26  ;;  %v701_v29 = vadd.f32 %v700_v27, %v501_v24  ;;  %v709_v42 = vmul.f32 0.5, %v699_v26 }
 0x2d0   :  { %v702_v30 = vpop.f32.mrf.mxu0 }
 0x2d1   :  { %v707_v31 = vmul.f32 %v705_v28, %v699_v26  ;;  %v706_v32 = vmul.f32 %v701_v29, %v701_v29  ;;  %v710_v43 = vmul.f32 0.5, %v701_v29 }
 0x2d2   :  { %v703_v33 = vpop.f32.mrf.mxu0 }
 0x2d3   :  { %v711_v34 = vmul.f32 0.044715, %v707_v31  ;;  %v708_v35 = vmul.f32 %v706_v32, %v701_v29 }
 0x2d5   :  { %v713_v36 = vadd.f32 %v711_v34, %v699_v26  ;;  %v712_v37 = vmul.f32 0.044715, %v708_v35 }
 0x2d7   :  { %v715_v38 = vmul.f32 0.7978846, %v713_v36  ;;  %v714_v39 = vadd.f32 %v712_v37, %v701_v29 }
 0x2d9   :  { %1177 = vtanh.f32 %v715_v38  ;;  %v716_v40 = vmul.f32 0.7978846, %v714_v39 }
 0x2db   :  { %1179 = vtanh.f32 %v716_v40 }
 0x2e6   :  { %v1178_v54 = vpop.eup %1177 }
 0x2e7   :  { %v719_v56 = vadd.f32 1.0, %v1178_v54 }
 0x2e8   :  { %v1180_v41 = vpop.eup %1179 }
 0x2e9   :  { %v720_v44 = vadd.f32 1.0, %v1180_v41  ;;  %v721_v45 = vmul.f32 %v719_v56, %v709_v42 }
 0x2eb   :  { %v722_v46 = vmul.f32 %v720_v44, %v710_v43  ;;  %v723_v48 = vpack.c.bf16 %v721_v45, %v721_v45 }
 0x2ed   :  { %v724_v47 = vpack.c.bf16 %v722_v46, %v722_v46 }
 0x2ef   :  { %892 = vmatprep.mubr.bf16.mxu1 %v724_v47 }
 0x2f0   :  { %893 = vmatmul.mubr.bf16.vlgmr.msra.gmra.mxu1 %v723_v48 }
 0x3b0   :  { %v1038_v49 = vpop.f32.mrf.mxu1 }
 0x3b2   :  { %v1039_v51 = vpop.f32.mrf.mxu1 }
 0x3b3   :  { %v1040_v52 = vadd.f32 %v1039_v51, %v1038_v49 }
 0x3b4   :  { %v1041_v53 = vpop.f32.mrf.mxu1 }
 0x3b5   :  { %v895_v55 = vadd.f32 %v1040_v52, %v1003_v50 }
 0x3b6   :  { %v1042_v57 = vpop.f32.mrf.mxu1 }
 0x3b7   :  { %1181 = vtanh.f32 %v895_v55 }
 0x3c4   :  { %v1182_v59 = vpop.eup %1181 }
 0x3c5   :  { %v908_v61 = vmul.f32 %v1182_v59, %v1020_v58 }
 0x3c7   :  { %v916_v62 = vadd.f32 %v1021_v60, %v908_v61 }
 0x3c9   :  { %917 = vst [vmem:[#allocation11] sm:$0xff] %v916_v62 }
 0x3ca   :  { %1294 = shalt.err (!%p1291_p1)
}
 0x3cb   :  { %927 = dma.vmem_to_hbm [thread:$0]  %s925_s12, 128, %s1439_s11, [#allocation4]  }
 0x3cc   :  { %1309 = dma.done.wait [#allocation4], 128  }
 0x3cd   :  { %1310 = vsyncadd [#allocation4], 4294967168 }
 0x3ce   :  { %931 = vsyncpa [#allocation3], 1 }
 0x3cf   :  { %932 = vsyncpa [#allocation6], 1 }
 0x3d0   :  { %933 = vsyncpa [#allocation9], 1 }
 0x3d1   :  { %934 = vsyncpa [#allocation4], 1 }

</bundles_post_ra>
